<compile_context>
chip_gen: v6e
topology: v6e:2x2x1
jax: 0.10.0
libtpu: 0.0.40
codegen_flags: <defaults>
</compile_context>

<pallas_src>
import functools

import jax
import jax.numpy as jnp
from jax.experimental import pallas as pl
from jax.experimental.pallas import tpu as pltpu


def _round_up(n, m):
    return (n + m - 1) // m * m


def lstm_fc_kernel(x2_ref, params_ref, out_ref, *, B, T, D, H):
    # x2_ref:     (B*T, D)  batch-major flattened input
    # params_ref: (rows, 4H) packed parameter slab
    # out_ref:    (B, 1)
    G = 4 * H

    # Static row offsets into the packed slab (zero-cost slices).
    r_wih = 0
    r_whh = D
    r_tail = D + H            # sublane-aligned (D=16, H=32 -> 48)

    wih = params_ref[r_wih:r_wih + D, :]          # (D, 4H)
    whh = params_ref[r_whh:r_whh + H, :]          # (H, 4H)
    tail = params_ref[r_tail:r_tail + 2, :]       # rows: bias, fc
    bias = tail[0:1, :]                           # (1, 4H)
    fc_row = tail[1:2, :]                         # (1, 4H)
    wfc = fc_row[:, 0:H]                          # (1, H)
    bfc = fc_row[:, H:H + 1]                      # (1, 1)

    # Single-pass bf16 MXU matmuls with f32 accumulation (intentional).
    wih_b = wih.astype(jnp.bfloat16)
    whh_b = whh.astype(jnp.bfloat16)
    x_b = x2_ref[...].astype(jnp.bfloat16)        # (B*T, D)

    # Hoisted input projection for ALL timesteps: one well-shaped MXU matmul,
    # off the serial chain.  Batch-major -> reshape (layout-trivial) and index
    # per timestep inside the loop.
    xp = jnp.dot(x_b, wih_b, preferred_element_type=jnp.float32) + bias
    xp3 = xp.reshape(B, T, G)                     # (B, T, 4H)

    # Hoisted gate-scale row: 2.0 on the g-gate block so ONE sigmoid pass
    # yields all four gates (tanh(x) == 2*sigmoid(2x) - 1).
    col = jax.lax.broadcasted_iota(jnp.int32, (1, G), 1)
    g_scale = jnp.where((col >= 2 * H) & (col < 3 * H), 2.0, 1.0)

    h = jnp.zeros((B, H), jnp.float32)
    c = jnp.zeros((B, H), jnp.float32)

    # Static unroll over time (T is small); only h @ W_hh stays on the serial
    # critical path.
    for t in range(T):
        gates = xp3[:, t, :] + jnp.dot(h.astype(jnp.bfloat16), whh_b,
                                       preferred_element_type=jnp.float32)
        sg = jax.nn.sigmoid(gates * g_scale)      # single full-vreg EUP pass
        i_g = sg[:, 0 * H:1 * H]
        f_g = sg[:, 1 * H:2 * H]
        g_g = 2.0 * sg[:, 2 * H:3 * H] - 1.0      # == tanh(gate_g), VPU only
        o_g = sg[:, 3 * H:4 * H]

        c = f_g * c + i_g * g_g
        h = o_g * jnp.tanh(c)

    # Linear(H, 1) + sigmoid as a lane reduction (no 1-column MXU pass).
    logit = jnp.sum(h * wfc, axis=-1, keepdims=True) + bfc
    out_ref[...] = jax.nn.sigmoid(logit)


def data_drift_predictor(x, packed_params, hidden_size=32):
    """x: (B, T, D) float32 (batch_first, like the PyTorch module). Returns (B, 1)."""
    B, T, D = x.shape
    H = hidden_size
    # Batch-major flatten: no transpose, no extra HBM copy in the wrapper.
    x2 = x.reshape(B * T, D)
    rows, lanes = packed_params.shape

    kernel = functools.partial(lstm_fc_kernel, B=B, T=T, D=D, H=H)
    out = pl.pallas_call(
        kernel,
        out_shape=jax.ShapeDtypeStruct((B, 1), jnp.float32),
        grid=(1,),  # single invocation: the whole recurrence runs in-kernel
        in_specs=[
            pl.BlockSpec((B * T, D), lambda i: (0, 0)),     # flattened x
            pl.BlockSpec((rows, lanes), lambda i: (0, 0)),  # packed params
        ],
        out_specs=pl.BlockSpec((B, 1), lambda i: (0, 0)),
        compiler_params=pltpu.CompilerParams(
            dimension_semantics=("arbitrary",),
        ),
    )(x2, packed_params)
    return out


def init_params(key, input_size, hidden_size):
    """Deterministic synthetic init matching nn.LSTM/nn.Linear shapes (raw)."""
    D, H = input_size, hidden_size
    k = jax.random.split(key, 6)
    s = 1.0 / jnp.sqrt(H)
    w_ih = jax.random.uniform(k[0], (4 * H, D), jnp.float32, -s, s)
    w_hh = jax.random.uniform(k[1], (4 * H, H), jnp.float32, -s, s)
    b_ih = jax.random.uniform(k[2], (4 * H,), jnp.float32, -s, s)
    b_hh = jax.random.uniform(k[3], (4 * H,), jnp.float32, -s, s)
    w_fc = jax.random.uniform(k[4], (1, H), jnp.float32, -s, s)
    b_fc = jax.random.uniform(k[5], (1,), jnp.float32, -s, s)
    return (w_ih, w_hh, b_ih, b_hh, w_fc, b_fc)


def pack_params(raw, input_size, hidden_size):
    """Pack all params into one lane/sublane-padded f32 slab.

    Rows: [0:D)        W_ih^T          (D, 4H)
          [D:D+H)      W_hh^T          (H, 4H)
          [D+H]        b_ih + b_hh     (1, 4H)
          [D+H+1]      [W_fc | b_fc]   (1, 4H)   (padded with zeros)
    Padded to a multiple of 8 rows.
    """
    w_ih, w_hh, b_ih, b_hh, w_fc, b_fc = raw
    D, H = input_size, hidden_size
    G = 4 * H
    assert G % 128 == 0, "packing assumes 4*H is a multiple of the 128-lane width"

    fc_row = jnp.zeros((1, G), jnp.float32)
    fc_row = fc_row.at[0, :H].set(w_fc[0])
    fc_row = fc_row.at[0, H].set(b_fc[0])

    slab = jnp.concatenate(
        [w_ih.T, w_hh.T, (b_ih + b_hh).reshape(1, G), fc_row], axis=0)
    n = slab.shape[0]
    pad = _round_up(n, 8) - n
    if pad:
        slab = jnp.concatenate([slab, jnp.zeros((pad, G), jnp.float32)], axis=0)
    return slab


def reference(x, raw):
    """Pure-JAX f32 reference of the PyTorch forward, for verification."""
    w_ih, w_hh, b_ih, b_hh, w_fc, b_fc = raw
    B, T, D = x.shape
    H = w_hh.shape[1]
    wih_t, whh_t = w_ih.T, w_hh.T
    bias = (b_ih + b_hh).reshape(1, 4 * H)
    h = jnp.zeros((B, H), jnp.float32)
    c = jnp.zeros((B, H), jnp.float32)

    def step(carry, x_t):
        h, c = carry
        gates = x_t @ wih_t + h @ whh_t + bias
        i = jax.nn.sigmoid(gates[:, 0 * H:1 * H])
        f = jax.nn.sigmoid(gates[:, 1 * H:2 * H])
        g = jnp.tanh(gates[:, 2 * H:3 * H])
        o = jax.nn.sigmoid(gates[:, 3 * H:4 * H])
        c = f * c + i * g
        h = o * jnp.tanh(c)
        return (h, c), None

    (h, c), _ = jax.lax.scan(step, (h, c), jnp.transpose(x, (1, 0, 2)))
    return jax.nn.sigmoid(h @ w_fc.T + b_fc.reshape(1, 1))


if __name__ == "__main__":
    B, T, D, H = 2, 8, 16, 32
    key = jax.random.PRNGKey(0)
    kx, kp = jax.random.split(key)
    x = jax.random.normal(kx, (B, T, D), jnp.float32)

    raw = init_params(kp, D, H)
    packed = pack_params(raw, D, H)

    out = data_drift_predictor(x, packed, hidden_size=H)
    jax.block_until_ready(out)

    ref = reference(x, raw)
    assert out.shape == (B, 1)
    # bf16 MXU matmuls with f32 accumulation are intentional (per perf review),
    # so the tolerance is relaxed relative to the f32 reference.
    assert jnp.allclose(out, ref, atol=1e-2, rtol=0.0), (out, ref)
    print("KERNEL_OK")
</pallas_src>

<mosaic_0001>
module attributes {stable_mosaic.version = 11 : i64} {
  func.func @lstm_fc_kernel(%arg0: i32, %arg1: memref<16x16xf32, #tpu.memory_space<vmem>>, %arg2: memref<56x128xf32, #tpu.memory_space<vmem>>, %arg3: memref<2x1xf32, #tpu.memory_space<vmem>>) attributes {dimension_semantics = [#tpu.dimension_semantics<arbitrary>], iteration_bounds = array<i64: 1>, scalar_prefetch = 0 : i64, scratch_operands = 0 : i64, tpu.core_type = #tpu.core_type<tc>, window_params = [{pipeline_mode = #tpu.pipeline_mode<synchronous>, transform_indices = @transform_0, window_bounds = array<i64: 16, 16>}, {pipeline_mode = #tpu.pipeline_mode<synchronous>, transform_indices = @transform_1, window_bounds = array<i64: 56, 128>}, {pipeline_mode = #tpu.pipeline_mode<synchronous>, transform_indices = @transform_2, window_bounds = array<i64: 2, 1>}]} {
    %c0 = arith.constant 0 : index
    %c0_0 = arith.constant 0 : index
    %0 = vector.load %arg2[%c0, %c0_0] : memref<56x128xf32, #tpu.memory_space<vmem>>, vector<16x128xf32>
    %c16 = arith.constant 16 : index
    %c0_1 = arith.constant 0 : index
    %1 = vector.load %arg2[%c16, %c0_1] : memref<56x128xf32, #tpu.memory_space<vmem>>, vector<32x128xf32>
    %c48 = arith.constant 48 : index
    %c0_2 = arith.constant 0 : index
    %2 = vector.load %arg2[%c48, %c0_2] : memref<56x128xf32, #tpu.memory_space<vmem>>, vector<2x128xf32>
    %3 = vector.extract_strided_slice %2 {offsets = [0, 0], sizes = [1, 128], strides = [1, 1]} : vector<2x128xf32> to vector<1x128xf32>
    %4 = vector.extract_strided_slice %2 {offsets = [1, 0], sizes = [1, 128], strides = [1, 1]} : vector<2x128xf32> to vector<1x128xf32>
    %5 = vector.extract_strided_slice %4 {offsets = [0, 0], sizes = [1, 32], strides = [1, 1]} : vector<1x128xf32> to vector<1x32xf32>
    %6 = vector.extract_strided_slice %4 {offsets = [0, 32], sizes = [1, 1], strides = [1, 1]} : vector<1x128xf32> to vector<1x1xf32>
    %7 = arith.truncf %0 : vector<16x128xf32> to vector<16x128xbf16>
    %8 = arith.truncf %1 : vector<32x128xf32> to vector<32x128xbf16>
    %c0_3 = arith.constant 0 : index
    %c0_4 = arith.constant 0 : index
    %9 = vector.load %arg1[%c0_3, %c0_4] : memref<16x16xf32, #tpu.memory_space<vmem>>, vector<16x16xf32>
    %10 = arith.truncf %9 : vector<16x16xf32> to vector<16x16xbf16>
    %cst = arith.constant dense<0.000000e+00> : vector<16x128xf32>
    %11 = tpu.matmul %10, %7, %cst {dimension_numbers = #tpu.dot_dimension_numbers<[1], [0], [0], [1], [0, 0, 1, 1], [], []>} : vector<16x16xbf16>, vector<16x128xbf16>, vector<16x128xf32> -> vector<16x128xf32>
    %12 = vector.broadcast %3 : vector<1x128xf32> to vector<16x128xf32>
    %13 = arith.addf %11, %12 : vector<16x128xf32>
    %14 = vector.shape_cast %13 : vector<16x128xf32> to vector<2x8x128xf32>
    %15 = tpu.iota {dimensions = array<i32: 1>} : vector<1x128xi32>
    %c64_i32 = arith.constant 64 : i32
    %16 = vector.broadcast %c64_i32 : i32 to vector<1x128xi32>
    %17 = arith.cmpi sge, %15, %16 : vector<1x128xi32>
    %c96_i32 = arith.constant 96 : i32
    %18 = vector.broadcast %c96_i32 : i32 to vector<1x128xi32>
    %19 = arith.cmpi slt, %15, %18 : vector<1x128xi32>
    %20 = arith.andi %17, %19 : vector<1x128xi1>
    %cst_5 = arith.constant 2.000000e+00 : f32
    %cst_6 = arith.constant 1.000000e+00 : f32
    %21 = vector.broadcast %cst_5 : f32 to vector<1x128xf32>
    %22 = vector.broadcast %cst_6 : f32 to vector<1x128xf32>
    %23 = arith.select %20, %21, %22 : vector<1x128xi1>, vector<1x128xf32>
    %cst_7 = arith.constant 0.000000e+00 : f32
    %24 = vector.broadcast %cst_7 : f32 to vector<2x32xf32>
    %cst_8 = arith.constant 0.000000e+00 : f32
    %25 = vector.broadcast %cst_8 : f32 to vector<2x32xf32>
    %26 = vector.extract_strided_slice %14 {offsets = [0, 0, 0], sizes = [2, 1, 128], strides = [1, 1, 1]} : vector<2x8x128xf32> to vector<2x1x128xf32>
    %27 = vector.shape_cast %26 : vector<2x1x128xf32> to vector<2x128xf32>
    %28 = arith.truncf %24 : vector<2x32xf32> to vector<2x32xbf16>
    %cst_9 = arith.constant dense<0.000000e+00> : vector<2x128xf32>
    %29 = tpu.matmul %28, %8, %cst_9 {dimension_numbers = #tpu.dot_dimension_numbers<[1], [0], [0], [1], [0, 0, 1, 1], [], []>} : vector<2x32xbf16>, vector<32x128xbf16>, vector<2x128xf32> -> vector<2x128xf32>
    %30 = arith.addf %27, %29 : vector<2x128xf32>
    %31 = vector.broadcast %23 : vector<1x128xf32> to vector<2x128xf32>
    %32 = arith.mulf %30, %31 : vector<2x128xf32>
    %33 = arith.negf %32 : vector<2x128xf32>
    %34 = math.exp %33 : vector<2x128xf32>
    %cst_10 = arith.constant 1.000000e+00 : f32
    %35 = vector.broadcast %cst_10 : f32 to vector<2x128xf32>
    %36 = arith.addf %35, %34 : vector<2x128xf32>
    %37 = arith.divf %35, %36 : vector<2x128xf32>
    %38 = vector.extract_strided_slice %37 {offsets = [0, 0], sizes = [2, 32], strides = [1, 1]} : vector<2x128xf32> to vector<2x32xf32>
    %39 = vector.extract_strided_slice %37 {offsets = [0, 32], sizes = [2, 32], strides = [1, 1]} : vector<2x128xf32> to vector<2x32xf32>
    %40 = vector.extract_strided_slice %37 {offsets = [0, 64], sizes = [2, 32], strides = [1, 1]} : vector<2x128xf32> to vector<2x32xf32>
    %cst_11 = arith.constant 2.000000e+00 : f32
    %41 = vector.broadcast %cst_11 : f32 to vector<2x32xf32>
    %42 = arith.mulf %41, %40 : vector<2x32xf32>
    %cst_12 = arith.constant 1.000000e+00 : f32
    %43 = vector.broadcast %cst_12 : f32 to vector<2x32xf32>
    %44 = arith.subf %42, %43 : vector<2x32xf32>
    %45 = vector.extract_strided_slice %37 {offsets = [0, 96], sizes = [2, 32], strides = [1, 1]} : vector<2x128xf32> to vector<2x32xf32>
    %46 = arith.mulf %39, %25 : vector<2x32xf32>
    %47 = arith.mulf %38, %44 : vector<2x32xf32>
    %48 = arith.addf %46, %47 : vector<2x32xf32>
    %49 = math.tanh %48 : vector<2x32xf32>
    %50 = arith.mulf %45, %49 : vector<2x32xf32>
    %51 = vector.extract_strided_slice %14 {offsets = [0, 1, 0], sizes = [2, 1, 128], strides = [1, 1, 1]} : vector<2x8x128xf32> to vector<2x1x128xf32>
    %52 = vector.shape_cast %51 : vector<2x1x128xf32> to vector<2x128xf32>
    %53 = arith.truncf %50 : vector<2x32xf32> to vector<2x32xbf16>
    %cst_13 = arith.constant dense<0.000000e+00> : vector<2x128xf32>
    %54 = tpu.matmul %53, %8, %cst_13 {dimension_numbers = #tpu.dot_dimension_numbers<[1], [0], [0], [1], [0, 0, 1, 1], [], []>} : vector<2x32xbf16>, vector<32x128xbf16>, vector<2x128xf32> -> vector<2x128xf32>
    %55 = arith.addf %52, %54 : vector<2x128xf32>
    %56 = vector.broadcast %23 : vector<1x128xf32> to vector<2x128xf32>
    %57 = arith.mulf %55, %56 : vector<2x128xf32>
    %58 = arith.negf %57 : vector<2x128xf32>
    %59 = math.exp %58 : vector<2x128xf32>
    %cst_14 = arith.constant 1.000000e+00 : f32
    %60 = vector.broadcast %cst_14 : f32 to vector<2x128xf32>
    %61 = arith.addf %60, %59 : vector<2x128xf32>
    %62 = arith.divf %60, %61 : vector<2x128xf32>
    %63 = vector.extract_strided_slice %62 {offsets = [0, 0], sizes = [2, 32], strides = [1, 1]} : vector<2x128xf32> to vector<2x32xf32>
    %64 = vector.extract_strided_slice %62 {offsets = [0, 32], sizes = [2, 32], strides = [1, 1]} : vector<2x128xf32> to vector<2x32xf32>
    %65 = vector.extract_strided_slice %62 {offsets = [0, 64], sizes = [2, 32], strides = [1, 1]} : vector<2x128xf32> to vector<2x32xf32>
    %cst_15 = arith.constant 2.000000e+00 : f32
    %66 = vector.broadcast %cst_15 : f32 to vector<2x32xf32>
    %67 = arith.mulf %66, %65 : vector<2x32xf32>
    %cst_16 = arith.constant 1.000000e+00 : f32
    %68 = vector.broadcast %cst_16 : f32 to vector<2x32xf32>
    %69 = arith.subf %67, %68 : vector<2x32xf32>
    %70 = vector.extract_strided_slice %62 {offsets = [0, 96], sizes = [2, 32], strides = [1, 1]} : vector<2x128xf32> to vector<2x32xf32>
    %71 = arith.mulf %64, %48 : vector<2x32xf32>
    %72 = arith.mulf %63, %69 : vector<2x32xf32>
    %73 = arith.addf %71, %72 : vector<2x32xf32>
    %74 = math.tanh %73 : vector<2x32xf32>
    %75 = arith.mulf %70, %74 : vector<2x32xf32>
    %76 = vector.extract_strided_slice %14 {offsets = [0, 2, 0], sizes = [2, 1, 128], strides = [1, 1, 1]} : vector<2x8x128xf32> to vector<2x1x128xf32>
    %77 = vector.shape_cast %76 : vector<2x1x128xf32> to vector<2x128xf32>
    %78 = arith.truncf %75 : vector<2x32xf32> to vector<2x32xbf16>
    %cst_17 = arith.constant dense<0.000000e+00> : vector<2x128xf32>
    %79 = tpu.matmul %78, %8, %cst_17 {dimension_numbers = #tpu.dot_dimension_numbers<[1], [0], [0], [1], [0, 0, 1, 1], [], []>} : vector<2x32xbf16>, vector<32x128xbf16>, vector<2x128xf32> -> vector<2x128xf32>
    %80 = arith.addf %77, %79 : vector<2x128xf32>
    %81 = vector.broadcast %23 : vector<1x128xf32> to vector<2x128xf32>
    %82 = arith.mulf %80, %81 : vector<2x128xf32>
    %83 = arith.negf %82 : vector<2x128xf32>
    %84 = math.exp %83 : vector<2x128xf32>
    %cst_18 = arith.constant 1.000000e+00 : f32
    %85 = vector.broadcast %cst_18 : f32 to vector<2x128xf32>
    %86 = arith.addf %85, %84 : vector<2x128xf32>
    %87 = arith.divf %85, %86 : vector<2x128xf32>
    %88 = vector.extract_strided_slice %87 {offsets = [0, 0], sizes = [2, 32], strides = [1, 1]} : vector<2x128xf32> to vector<2x32xf32>
    %89 = vector.extract_strided_slice %87 {offsets = [0, 32], sizes = [2, 32], strides = [1, 1]} : vector<2x128xf32> to vector<2x32xf32>
    %90 = vector.extract_strided_slice %87 {offsets = [0, 64], sizes = [2, 32], strides = [1, 1]} : vector<2x128xf32> to vector<2x32xf32>
    %cst_19 = arith.constant 2.000000e+00 : f32
    %91 = vector.broadcast %cst_19 : f32 to vector<2x32xf32>
    %92 = arith.mulf %91, %90 : vector<2x32xf32>
    %cst_20 = arith.constant 1.000000e+00 : f32
    %93 = vector.broadcast %cst_20 : f32 to vector<2x32xf32>
    %94 = arith.subf %92, %93 : vector<2x32xf32>
    %95 = vector.extract_strided_slice %87 {offsets = [0, 96], sizes = [2, 32], strides = [1, 1]} : vector<2x128xf32> to vector<2x32xf32>
    %96 = arith.mulf %89, %73 : vector<2x32xf32>
    %97 = arith.mulf %88, %94 : vector<2x32xf32>
    %98 = arith.addf %96, %97 : vector<2x32xf32>
    %99 = math.tanh %98 : vector<2x32xf32>
    %100 = arith.mulf %95, %99 : vector<2x32xf32>
    %101 = vector.extract_strided_slice %14 {offsets = [0, 3, 0], sizes = [2, 1, 128], strides = [1, 1, 1]} : vector<2x8x128xf32> to vector<2x1x128xf32>
    %102 = vector.shape_cast %101 : vector<2x1x128xf32> to vector<2x128xf32>
    %103 = arith.truncf %100 : vector<2x32xf32> to vector<2x32xbf16>
    %cst_21 = arith.constant dense<0.000000e+00> : vector<2x128xf32>
    %104 = tpu.matmul %103, %8, %cst_21 {dimension_numbers = #tpu.dot_dimension_numbers<[1], [0], [0], [1], [0, 0, 1, 1], [], []>} : vector<2x32xbf16>, vector<32x128xbf16>, vector<2x128xf32> -> vector<2x128xf32>
    %105 = arith.addf %102, %104 : vector<2x128xf32>
    %106 = vector.broadcast %23 : vector<1x128xf32> to vector<2x128xf32>
    %107 = arith.mulf %105, %106 : vector<2x128xf32>
    %108 = arith.negf %107 : vector<2x128xf32>
    %109 = math.exp %108 : vector<2x128xf32>
    %cst_22 = arith.constant 1.000000e+00 : f32
    %110 = vector.broadcast %cst_22 : f32 to vector<2x128xf32>
    %111 = arith.addf %110, %109 : vector<2x128xf32>
    %112 = arith.divf %110, %111 : vector<2x128xf32>
    %113 = vector.extract_strided_slice %112 {offsets = [0, 0], sizes = [2, 32], strides = [1, 1]} : vector<2x128xf32> to vector<2x32xf32>
    %114 = vector.extract_strided_slice %112 {offsets = [0, 32], sizes = [2, 32], strides = [1, 1]} : vector<2x128xf32> to vector<2x32xf32>
    %115 = vector.extract_strided_slice %112 {offsets = [0, 64], sizes = [2, 32], strides = [1, 1]} : vector<2x128xf32> to vector<2x32xf32>
    %cst_23 = arith.constant 2.000000e+00 : f32
    %116 = vector.broadcast %cst_23 : f32 to vector<2x32xf32>
    %117 = arith.mulf %116, %115 : vector<2x32xf32>
    %cst_24 = arith.constant 1.000000e+00 : f32
    %118 = vector.broadcast %cst_24 : f32 to vector<2x32xf32>
    %119 = arith.subf %117, %118 : vector<2x32xf32>
    %120 = vector.extract_strided_slice %112 {offsets = [0, 96], sizes = [2, 32], strides = [1, 1]} : vector<2x128xf32> to vector<2x32xf32>
    %121 = arith.mulf %114, %98 : vector<2x32xf32>
    %122 = arith.mulf %113, %119 : vector<2x32xf32>
    %123 = arith.addf %121, %122 : vector<2x32xf32>
    %124 = math.tanh %123 : vector<2x32xf32>
    %125 = arith.mulf %120, %124 : vector<2x32xf32>
    %126 = vector.extract_strided_slice %14 {offsets = [0, 4, 0], sizes = [2, 1, 128], strides = [1, 1, 1]} : vector<2x8x128xf32> to vector<2x1x128xf32>
    %127 = vector.shape_cast %126 : vector<2x1x128xf32> to vector<2x128xf32>
    %128 = arith.truncf %125 : vector<2x32xf32> to vector<2x32xbf16>
    %cst_25 = arith.constant dense<0.000000e+00> : vector<2x128xf32>
    %129 = tpu.matmul %128, %8, %cst_25 {dimension_numbers = #tpu.dot_dimension_numbers<[1], [0], [0], [1], [0, 0, 1, 1], [], []>} : vector<2x32xbf16>, vector<32x128xbf16>, vector<2x128xf32> -> vector<2x128xf32>
    %130 = arith.addf %127, %129 : vector<2x128xf32>
    %131 = vector.broadcast %23 : vector<1x128xf32> to vector<2x128xf32>
    %132 = arith.mulf %130, %131 : vector<2x128xf32>
    %133 = arith.negf %132 : vector<2x128xf32>
    %134 = math.exp %133 : vector<2x128xf32>
    %cst_26 = arith.constant 1.000000e+00 : f32
    %135 = vector.broadcast %cst_26 : f32 to vector<2x128xf32>
    %136 = arith.addf %135, %134 : vector<2x128xf32>
    %137 = arith.divf %135, %136 : vector<2x128xf32>
    %138 = vector.extract_strided_slice %137 {offsets = [0, 0], sizes = [2, 32], strides = [1, 1]} : vector<2x128xf32> to vector<2x32xf32>
    %139 = vector.extract_strided_slice %137 {offsets = [0, 32], sizes = [2, 32], strides = [1, 1]} : vector<2x128xf32> to vector<2x32xf32>
    %140 = vector.extract_strided_slice %137 {offsets = [0, 64], sizes = [2, 32], strides = [1, 1]} : vector<2x128xf32> to vector<2x32xf32>
    %cst_27 = arith.constant 2.000000e+00 : f32
    %141 = vector.broadcast %cst_27 : f32 to vector<2x32xf32>
    %142 = arith.mulf %141, %140 : vector<2x32xf32>
    %cst_28 = arith.constant 1.000000e+00 : f32
    %143 = vector.broadcast %cst_28 : f32 to vector<2x32xf32>
    %144 = arith.subf %142, %143 : vector<2x32xf32>
    %145 = vector.extract_strided_slice %137 {offsets = [0, 96], sizes = [2, 32], strides = [1, 1]} : vector<2x128xf32> to vector<2x32xf32>
    %146 = arith.mulf %139, %123 : vector<2x32xf32>
    %147 = arith.mulf %138, %144 : vector<2x32xf32>
    %148 = arith.addf %146, %147 : vector<2x32xf32>
    %149 = math.tanh %148 : vector<2x32xf32>
    %150 = arith.mulf %145, %149 : vector<2x32xf32>
    %151 = vector.extract_strided_slice %14 {offsets = [0, 5, 0], sizes = [2, 1, 128], strides = [1, 1, 1]} : vector<2x8x128xf32> to vector<2x1x128xf32>
    %152 = vector.shape_cast %151 : vector<2x1x128xf32> to vector<2x128xf32>
    %153 = arith.truncf %150 : vector<2x32xf32> to vector<2x32xbf16>
    %cst_29 = arith.constant dense<0.000000e+00> : vector<2x128xf32>
    %154 = tpu.matmul %153, %8, %cst_29 {dimension_numbers = #tpu.dot_dimension_numbers<[1], [0], [0], [1], [0, 0, 1, 1], [], []>} : vector<2x32xbf16>, vector<32x128xbf16>, vector<2x128xf32> -> vector<2x128xf32>
    %155 = arith.addf %152, %154 : vector<2x128xf32>
    %156 = vector.broadcast %23 : vector<1x128xf32> to vector<2x128xf32>
    %157 = arith.mulf %155, %156 : vector<2x128xf32>
    %158 = arith.negf %157 : vector<2x128xf32>
    %159 = math.exp %158 : vector<2x128xf32>
    %cst_30 = arith.constant 1.000000e+00 : f32
    %160 = vector.broadcast %cst_30 : f32 to vector<2x128xf32>
    %161 = arith.addf %160, %159 : vector<2x128xf32>
    %162 = arith.divf %160, %161 : vector<2x128xf32>
    %163 = vector.extract_strided_slice %162 {offsets = [0, 0], sizes = [2, 32], strides = [1, 1]} : vector<2x128xf32> to vector<2x32xf32>
    %164 = vector.extract_strided_slice %162 {offsets = [0, 32], sizes = [2, 32], strides = [1, 1]} : vector<2x128xf32> to vector<2x32xf32>
    %165 = vector.extract_strided_slice %162 {offsets = [0, 64], sizes = [2, 32], strides = [1, 1]} : vector<2x128xf32> to vector<2x32xf32>
    %cst_31 = arith.constant 2.000000e+00 : f32
    %166 = vector.broadcast %cst_31 : f32 to vector<2x32xf32>
    %167 = arith.mulf %166, %165 : vector<2x32xf32>
    %cst_32 = arith.constant 1.000000e+00 : f32
    %168 = vector.broadcast %cst_32 : f32 to vector<2x32xf32>
    %169 = arith.subf %167, %168 : vector<2x32xf32>
    %170 = vector.extract_strided_slice %162 {offsets = [0, 96], sizes = [2, 32], strides = [1, 1]} : vector<2x128xf32> to vector<2x32xf32>
    %171 = arith.mulf %164, %148 : vector<2x32xf32>
    %172 = arith.mulf %163, %169 : vector<2x32xf32>
    %173 = arith.addf %171, %172 : vector<2x32xf32>
    %174 = math.tanh %173 : vector<2x32xf32>
    %175 = arith.mulf %170, %174 : vector<2x32xf32>
    %176 = vector.extract_strided_slice %14 {offsets = [0, 6, 0], sizes = [2, 1, 128], strides = [1, 1, 1]} : vector<2x8x128xf32> to vector<2x1x128xf32>
    %177 = vector.shape_cast %176 : vector<2x1x128xf32> to vector<2x128xf32>
    %178 = arith.truncf %175 : vector<2x32xf32> to vector<2x32xbf16>
    %cst_33 = arith.constant dense<0.000000e+00> : vector<2x128xf32>
    %179 = tpu.matmul %178, %8, %cst_33 {dimension_numbers = #tpu.dot_dimension_numbers<[1], [0], [0], [1], [0, 0, 1, 1], [], []>} : vector<2x32xbf16>, vector<32x128xbf16>, vector<2x128xf32> -> vector<2x128xf32>
    %180 = arith.addf %177, %179 : vector<2x128xf32>
    %181 = vector.broadcast %23 : vector<1x128xf32> to vector<2x128xf32>
    %182 = arith.mulf %180, %181 : vector<2x128xf32>
    %183 = arith.negf %182 : vector<2x128xf32>
    %184 = math.exp %183 : vector<2x128xf32>
    %cst_34 = arith.constant 1.000000e+00 : f32
    %185 = vector.broadcast %cst_34 : f32 to vector<2x128xf32>
    %186 = arith.addf %185, %184 : vector<2x128xf32>
    %187 = arith.divf %185, %186 : vector<2x128xf32>
    %188 = vector.extract_strided_slice %187 {offsets = [0, 0], sizes = [2, 32], strides = [1, 1]} : vector<2x128xf32> to vector<2x32xf32>
    %189 = vector.extract_strided_slice %187 {offsets = [0, 32], sizes = [2, 32], strides = [1, 1]} : vector<2x128xf32> to vector<2x32xf32>
    %190 = vector.extract_strided_slice %187 {offsets = [0, 64], sizes = [2, 32], strides = [1, 1]} : vector<2x128xf32> to vector<2x32xf32>
    %cst_35 = arith.constant 2.000000e+00 : f32
    %191 = vector.broadcast %cst_35 : f32 to vector<2x32xf32>
    %192 = arith.mulf %191, %190 : vector<2x32xf32>
    %cst_36 = arith.constant 1.000000e+00 : f32
    %193 = vector.broadcast %cst_36 : f32 to vector<2x32xf32>
    %194 = arith.subf %192, %193 : vector<2x32xf32>
    %195 = vector.extract_strided_slice %187 {offsets = [0, 96], sizes = [2, 32], strides = [1, 1]} : vector<2x128xf32> to vector<2x32xf32>
    %196 = arith.mulf %189, %173 : vector<2x32xf32>
    %197 = arith.mulf %188, %194 : vector<2x32xf32>
    %198 = arith.addf %196, %197 : vector<2x32xf32>
    %199 = math.tanh %198 : vector<2x32xf32>
    %200 = arith.mulf %195, %199 : vector<2x32xf32>
    %201 = vector.extract_strided_slice %14 {offsets = [0, 7, 0], sizes = [2, 1, 128], strides = [1, 1, 1]} : vector<2x8x128xf32> to vector<2x1x128xf32>
    %202 = vector.shape_cast %201 : vector<2x1x128xf32> to vector<2x128xf32>
    %203 = arith.truncf %200 : vector<2x32xf32> to vector<2x32xbf16>
    %cst_37 = arith.constant dense<0.000000e+00> : vector<2x128xf32>
    %204 = tpu.matmul %203, %8, %cst_37 {dimension_numbers = #tpu.dot_dimension_numbers<[1], [0], [0], [1], [0, 0, 1, 1], [], []>} : vector<2x32xbf16>, vector<32x128xbf16>, vector<2x128xf32> -> vector<2x128xf32>
    %205 = arith.addf %202, %204 : vector<2x128xf32>
    %206 = vector.broadcast %23 : vector<1x128xf32> to vector<2x128xf32>
    %207 = arith.mulf %205, %206 : vector<2x128xf32>
    %208 = arith.negf %207 : vector<2x128xf32>
    %209 = math.exp %208 : vector<2x128xf32>
    %cst_38 = arith.constant 1.000000e+00 : f32
    %210 = vector.broadcast %cst_38 : f32 to vector<2x128xf32>
    %211 = arith.addf %210, %209 : vector<2x128xf32>
    %212 = arith.divf %210, %211 : vector<2x128xf32>
    %213 = vector.extract_strided_slice %212 {offsets = [0, 0], sizes = [2, 32], strides = [1, 1]} : vector<2x128xf32> to vector<2x32xf32>
    %214 = vector.extract_strided_slice %212 {offsets = [0, 32], sizes = [2, 32], strides = [1, 1]} : vector<2x128xf32> to vector<2x32xf32>
    %215 = vector.extract_strided_slice %212 {offsets = [0, 64], sizes = [2, 32], strides = [1, 1]} : vector<2x128xf32> to vector<2x32xf32>
    %cst_39 = arith.constant 2.000000e+00 : f32
    %216 = vector.broadcast %cst_39 : f32 to vector<2x32xf32>
    %217 = arith.mulf %216, %215 : vector<2x32xf32>
    %cst_40 = arith.constant 1.000000e+00 : f32
    %218 = vector.broadcast %cst_40 : f32 to vector<2x32xf32>
    %219 = arith.subf %217, %218 : vector<2x32xf32>
    %220 = vector.extract_strided_slice %212 {offsets = [0, 96], sizes = [2, 32], strides = [1, 1]} : vector<2x128xf32> to vector<2x32xf32>
    %221 = arith.mulf %214, %198 : vector<2x32xf32>
    %222 = arith.mulf %213, %219 : vector<2x32xf32>
    %223 = arith.addf %221, %222 : vector<2x32xf32>
    %224 = math.tanh %223 : vector<2x32xf32>
    %225 = arith.mulf %220, %224 : vector<2x32xf32>
    %226 = vector.broadcast %5 : vector<1x32xf32> to vector<2x32xf32>
    %227 = arith.mulf %225, %226 : vector<2x32xf32>
    %cst_41 = arith.constant dense<0.000000e+00> : vector<2xf32>
    %228 = vector.multi_reduction <add>, %227, %cst_41 [1] : vector<2x32xf32> to vector<2xf32>
    %229 = vector.shape_cast %228 : vector<2xf32> to vector<2x1xf32>
    %230 = vector.broadcast %6 : vector<1x1xf32> to vector<2x1xf32>
    %231 = arith.addf %229, %230 : vector<2x1xf32>
    %232 = arith.negf %231 : vector<2x1xf32>
    %233 = math.exp %232 : vector<2x1xf32>
    %cst_42 = arith.constant 1.000000e+00 : f32
    %234 = vector.broadcast %cst_42 : f32 to vector<2x1xf32>
    %235 = arith.addf %234, %233 : vector<2x1xf32>
    %236 = arith.divf %234, %235 : vector<2x1xf32>
    %c0_43 = arith.constant 0 : index
    %c0_44 = arith.constant 0 : index
    %237 = vector.load %arg3[%c0_43, %c0_44] : memref<2x1xf32, #tpu.memory_space<vmem>>, vector<2x1xf32>
    tpu.vector_store %arg3[%c0_43, %c0_44], %236 {strides = array<i32>} : memref<2x1xf32, #tpu.memory_space<vmem>>, vector<2x1xf32>,
    return
  }
  func.func @transform_0(%arg0: i32) -> (i32, i32) {
    %c0_i32 = arith.constant 0 : i32
    %c0_i32_0 = arith.constant 0 : i32
    %c0_i32_1 = arith.constant 0 : i32
    return %c0_i32, %c0_i32_0 : i32, i32
  }
  func.func @transform_1(%arg0: i32) -> (i32, i32) {
    %c0_i32 = arith.constant 0 : i32
    %c0_i32_0 = arith.constant 0 : i32
    %c0_i32_1 = arith.constant 0 : i32
    return %c0_i32, %c0_i32_0 : i32, i32
  }
  func.func @transform_2(%arg0: i32) -> (i32, i32) {
    %c0_i32 = arith.constant 0 : i32
    %c0_i32_0 = arith.constant 0 : i32
    %c0_i32_1 = arith.constant 0 : i32
    return %c0_i32, %c0_i32_0 : i32, i32
  }
}

</mosaic_0001>

<bundles_post_ra>
// kernel: tpu_custom_call.1
= control target key start
LH: loop header
LB: loop body
LE: loop exit
PB: predicated region body
PF: predicated region fallthrough
CT: control target
= control target key end

     0   :  { %7 = vsyncpa [#allocation3], 0  ;;  %s1650_s0 = inlined_call_operand.hbm [shape: f32[16,16], index: 0, kind: input, shape index: {}]   ;;  %s1651_s1 = inlined_call_operand.hbm [shape: f32[56,128], index: 1, kind: input, shape index: {}]   ;;  %s1652_s2 = inlined_call_operand.vmem [shape: f32[2,1], index: 2, kind: output, shape index: {}]  }
   0x1   :  { %8 = vsyncpa [#allocation5], 0  ;;  %s1405_s9 = smov [#allocation2]  }
   0x2   :  { %s14_s10 = sshll.u32 %s1405_s9, 4  ;;  %s15_s10 = int_to_ptr.vmem [resolvable:$true] %s14_s10 }
   0x3   :  { %s1369_s11 = scalar_lea.vmem %s15_s10, 256  ;;  %p1374_p1 = scmp.lt.s32.totalorder %s15_s10, %s15_s10 }
   0x4   :  { %p1370_p0 = scmp.ne.s32.totalorder %s15_s10, %s1369_s11  ;;  %p1375_p2 = scmp.lt.s32.totalorder %s1369_s11, %s1369_s11 }
   0x6   :  { %p1376_p3 = por %p1375_p2, %p1374_p1 }
   0x8   :  { %p1377_p4 = pnand %p1376_p3, %p1370_p0 }
   0xa   :  { %1380 = shalt.err (!%p1377_p4)
}
   0xb   :  { %s1406_s12 = smov 128   ;;  %s1407_s13 = smov 8  }
   0xc   :  { %20 = dma.hbm_to_vmem [thread:$0]  %s1650_s0, 256, %s15_s10, [#allocation3], %s1406_s12, %s1406_s12, %s1407_s13  }
   0xd   :  { %s1408_s16 = smov [#allocation4]  }
   0xe   :  { %s26_s17 = sshll.u32 %s1408_s16, 4  ;;  %s27_s17 = int_to_ptr.vmem [resolvable:$true] %s26_s17 }
   0xf   :  { %s1389_s18 = scalar_lea.vmem %s27_s17, 896  ;;  %p1394_p6 = scmp.lt.s32.totalorder %s27_s17, %s27_s17 }
  0x10   :  { %p1390_p5 = scmp.ne.s32.totalorder %s27_s17, %s1389_s18  ;;  %p1395_p7 = scmp.lt.s32.totalorder %s1389_s18, %s1389_s18 }
  0x12   :  { %p1396_p8 = por %p1395_p7, %p1394_p6 }
  0x14   :  { %p1397_p9 = pnand %p1396_p8, %p1390_p5 }
  0x16   :  { %1400 = shalt.err (!%p1397_p9)
}
  0x17   :  { %32 = dma.hbm_to_vmem [thread:$0]  %s1651_s1, 896, %s27_s17, [#allocation5], %s1406_s12, %s1406_s12, %s1407_s13  }
  0x18   :  { %1401 = dma.done.wait [#allocation3], 256  }
  0x19   :  { %1402 = vsyncadd [#allocation3], 4294967040 }
  0x1a   :  { %1403 = dma.done.wait [#allocation5], 896  }
  0x1b   :  { %1404 = vsyncadd [#allocation5], 4294966400  ;;  %v1409_v0 = vmov 0.0   ;;  %vm1410_vm0 = vmmov 0   ;;  %v40_v1 = vld [vmem:[#allocation4] sm:$0xff]  ;;  %v41_v2 = vld [vmem:[#allocation4 + $0x8] sm:$0xff]  ;;  %v53_v14 = vlaneseq }
  0x1c   :  { %1175 = vmatprep.subr.bf16.mxu0 %v1409_v0  ;;  %1181 = vmatprep.subr.bf16.mxu1 %v1409_v0  ;;  %v44_v3 = vld [vmem:[#allocation4 + $0x20] sm:$0xff]  ;;  %v47_v4 = vpack.c.bf16 %v41_v2, %v40_v1  ;;  %v45_v5 = vld [vmem:[#allocation4 + $0x28] sm:$0xff]  ;;  %v50_v6 = vld [vmem:[#allocation2] sm:$0xff]  ;;  %vm57_vm1 = vcmask 130048   ;;  %v1411_v13 = vmov 0   ;;  %v1412_v24 = vmov 1.0  }
  0x1d   :  { %1177 = vmatprep.mubr.msk.bf16.mxu0 %vm1410_vm0, %v1409_v0  ;;  %1185 = vmatprep.mubr.msk.bf16.mxu1 %vm1410_vm0, %v1409_v0  ;;  %v51_v7 = vld [vmem:[#allocation2 + $0x8] sm:$0xff]  ;;  %v1443_v8 = vpack.c.bf16 %v45_v5, %v44_v3  ;;  %v42_v10 = vld [vmem:[#allocation4 + $0x10] sm:$0xff]  ;;  %v1464_v15 = vshrl.u32 %v53_v14, 7  ;;  %v103_v16 = vand.u32 127, %v53_v14  ;;  %s1413_s0 = smov 64   ;;  %s1414_s1 = smov 32  }
  0x1e   :  { %v52_v9 = vpack.c.bf16 %v51_v7, %v50_v6  ;;  %v43_v11 = vld [vmem:[#allocation4 + $0x18] sm:$0xff]  ;;  %1176 = vmatpush3.bf16.msra.mxu0 %v47_v4  ;;  %v46_v18 = vld [vmem:[#allocation4 + $0x30] sm:$0x3]  ;;  %vm217_vm5 = vcmask 1041409   ;;  %vm108_vm6 = vcmask 261120   ;;  %s1415_s21 = smov 96  }
  0x1f   :  { %1182 = vmatpush3.bf16.msra.mxu1 %v1443_v8  ;;  %v1446_v12 = vpack.c.bf16 %v43_v11, %v42_v10  ;;  %1189 = vmatprep.subr.bf16.mxu0 %v1409_v0  ;;  %v55_v17 = vsub.s32 0, %v1464_v15  ;;  %vm104_vm2 = vcmp.ge.s32.totalorder %v103_v16, 64  ;;  %vm105_vm3 = vcmp.lt.s32.totalorder %v103_v16, 96 }
  0x20   :  { %1183 = vmatprep.subr.bf16.mxu1 %v1409_v0  ;;  %vm106_vm4 = vmand %vm104_vm2, %vm105_vm3  ;;  %vm1067_vm7 = vcmask 261127   ;;  %vm1071_vm8 = vcmask 253952   ;;  %vm1097_vm9 = vcmask 7175   ;;  %vm1099_vm10 = vcmask 0  }
  0x21   :  { %1178 = vmatmul.mubr.msk.bf16.vlgmr.msra.gmra.mxu0 %vm57_vm1, %v52_v9  ;;  %v56_v19 = vrot.slane %v46_v18, %v55_v17  ;;  %v1469_v25 = vsel %vm106_vm4, 2.0, %v1412_v24 }
  0x22   :  { %1190 = vmatpush3.bf16.msra.mxu0 %v1443_v8  ;;  %1193 = vmatprep.mubr.msk.bf16.mxu0 %vm1410_vm0, %v1409_v0 }
  0x23   :  { %1184 = vmatpush3.bf16.msra.mxu1 %v1446_v12  ;;  %1191 = vmatprep.subr.bf16.mxu0 %v1409_v0 }
  0x24   :  { %1197 = vmatprep.subr.bf16.mxu1 %v1409_v0 }
  0x26   :  { %1186 = vmatmul.mubr.bf16.vlgmr.msra.gmra.mxu1 %v1411_v13  ;;  %1192 = vmatpush3.bf16.msra.mxu0 %v1446_v12 }
  0x27   :  { %1198 = vmatpush3.bf16.msra.mxu1 %v1443_v8  ;;  %1201 = vmatprep.mubr.msk.bf16.mxu1 %vm1410_vm0, %v1409_v0 }
  0x28   :  { %1199 = vmatprep.subr.bf16.mxu1 %v1409_v0  ;;  %1205 = vmatprep.subr.bf16.mxu0 %v1409_v0 }
  0x2b   :  { %1200 = vmatpush3.bf16.msra.mxu1 %v1446_v12 }
  0x2c   :  { %1213 = vmatprep.subr.bf16.mxu1 %v1409_v0 }
  0xe1   :  { %v95_v20 = vpop.f32.mrf.mxu0 }
  0xe2   :  { %v1467_v22 = vadd.f32 %v95_v20, %v56_v19 }
  0xe3   :  { %v1179_v21 = vpop.f32.mrf.mxu0 }
  0xe5   :  { %v98_v23 = vpop.f32.mrf.mxu0 }
  0xe6   :  { %v1471_v26 = vadd.f32 %v98_v23, %v56_v19  ;;  %v146_v27 = vpop.f32.mrf.mxu1 }
  0xe7   :  { %v153_v28 = vrot.slane %v146_v27, 1  ;;  %v156_v29 = vadd.f32 %v146_v27, %v1467_v22  ;;  %v1180_v30 = vpop.f32.mrf.mxu0 }
  0xe8   :  { %v1187_v31 = vpop.f32.mrf.mxu1 }
  0xe9   :  { %v157_v32 = vadd.f32 %v153_v28, %v1471_v26  ;;  %v158_v33 = vmul.f32 %v156_v29, %v1469_v25 }
  0xea   :  { %v149_v34 = vpop.f32.mrf.mxu1 }
  0xeb   :  { %v159_v35 = vmul.f32 %v157_v32, %v1469_v25  ;;  %v1108_v36 = vmul.f32 -1.442695, %v158_v33 }
  0xec   :  { %v1188_v37 = vpop.f32.mrf.mxu1 }
  0xed   :  { %1256 = vpow2.f32 %v1108_v36  ;;  %v1109_v38 = vmul.f32 -1.442695, %v159_v35 }
  0xef   :  { %1258 = vpow2.f32 %v1109_v38 }
  0xfa   :  { %v1257_v39 = vpop.eup %1256 }
  0xfb   :  { %v166_v40 = vadd.f32 1.0, %v1257_v39 }
  0xfc   :  { %v1259_v41 = vpop.eup %1258 }
  0xfd   :  { %v167_v42 = vadd.f32 1.0, %v1259_v41  ;;  %1260 = vrcp.f32 %v166_v40 }
  0xff   :  { %1262 = vrcp.f32 %v167_v42 }
 0x10a   :  { %v1261_v43 = vpop.eup %1260 }
 0x10b   :  { %v172_v47 = vmul.f32 2.0, %v1261_v43  ;;  %v176_v56 = vmul.f32 0.0, %v1261_v43 }
 0x10c   :  { %v1263_v44 = vpop.eup %1262 }
 0x10d   :  { %v173_v45 = vmul.f32 2.0, %v1263_v44  ;;  %v1110_v48 = vadd.f32 -1.0, %v172_v47  ;;  %v177_v53 = vmul.f32 0.0, %v1263_v44 }
 0x10f   :  { %v1111_v46 = vadd.f32 -1.0, %v173_v45 }
 0x111   :  { %182 = vrot.lane.b32.xlu0 %v1111_v46, %s1413_s0 }
 0x115   :  { %180 = vrot.lane.b32.xlu0 %v1110_v48, %s1413_s0 }
 0x183   :  { %v183_v49 = vpop.permute.xlu0 %182 }
 0x184   :  { %v187_v50 = vmul.f32 %v1263_v44, %v183_v49 }
 0x186   :  { %192 = vrot.lane.b32.xlu1 %v187_v50, %s1414_s1 }
 0x187   :  { %v181_v51 = vpop.permute.xlu0 %180 }
 0x188   :  { %v186_v52 = vmul.f32 %v1261_v43, %v181_v51 }
 0x18a   :  { %190 = vrot.lane.b32.xlu1 %v186_v52, %s1414_s1 }
 0x1f8   :  { %v193_v54 = vpop.permute.xlu1 %192 }
 0x1f9   :  { %v1481_v55 = vadd.f32 %v193_v54, %v177_v53 }
 0x1fb   :  { %1264 = vtanh.f32 %v1481_v55  ;;  %v292_v41 = vrot.slane %v1481_v55, 7 }
 0x1fc   :  { %v191_v57 = vpop.permute.xlu1 %190 }
 0x1fd   :  { %v1484_v58 = vadd.f32 %v191_v57, %v176_v56 }
 0x1ff   :  { %1266 = vtanh.f32 %v1484_v58  ;;  %v291_v42 = vrot.slane %v1484_v58, 7 }
 0x208   :  { %v1265_v59 = vpop.eup %1264 }
 0x209   :  { %204 = vrot.lane.b32.xlu0 %v1265_v59, %s1413_s0 }
 0x20c   :  { %v1267_v60 = vpop.eup %1266 }
 0x20d   :  { %202 = vrot.lane.b32.xlu1 %v1267_v60, %s1413_s0 }
 0x27b   :  { %v205_v61 = vpop.permute.xlu0 %204 }
 0x27c   :  { %v209_v62 = vmul.f32 %v1263_v44, %v205_v61 }
 0x27e   :  { %v211_v63 = vpack.c.bf16 %v209_v62, %v209_v62 }
 0x27f   :  { %v203_v1 = vpop.permute.xlu1 %202 }
 0x280   :  { %v215_v2 = vunpack.c.l.b16 %v211_v63  ;;  %v208_v3 = vmul.f32 %v1261_v43, %v203_v1 }
 0x282   :  { %v210_v4 = vpack.c.bf16 %v208_v3, %v208_v3  ;;  %v216_v5 = vrot.slane %v215_v2, 7 }
 0x284   :  { %v214_v6 = vunpack.c.l.b16 %v210_v4 }
 0x286   :  { %v218_v7 = vsel %vm217_vm5, %v216_v5, %v214_v6 }
 0x287   :  { %v219_v9 = vpack.c.b16 %v218_v7, %v218_v7 }
 0x289   :  { %220 = vrot.lane.b32.xlu0 %v219_v9, %s1414_s1 }
 0x2fb   :  { %v221_v10 = vpop.permute.xlu0 %220 }
 0x2fc   :  { %1194 = vmatmul.mubr.msk.bf16.vlgmr.msra.gmra.mxu0 %vm108_vm6, %v221_v10 }
 0x2fd   :  { %1206 = vmatpush3.bf16.msra.mxu0 %v1443_v8  ;;  %1209 = vmatprep.mubr.msk.bf16.mxu0 %vm1410_vm0, %v1409_v0 }
 0x2fe   :  { %1207 = vmatprep.subr.bf16.mxu0 %v1409_v0 }
 0x301   :  { %1208 = vmatpush3.bf16.msra.mxu0 %v1446_v12 }
 0x302   :  { %1221 = vmatprep.subr.bf16.mxu0 %v1409_v0 }
 0x3bc   :  { %v259_v11 = vpop.f32.mrf.mxu0 }
 0x3bd   :  { %v266_v13 = vrot.slane %v259_v11, 7  ;;  %v270_v14 = vadd.f32 %v259_v11, %v1471_v26 }
 0x3be   :  { %v1195_v16 = vpop.f32.mrf.mxu0 }
 0x3bf   :  { %v269_v17 = vadd.f32 %v266_v13, %v1467_v22  ;;  %v272_v18 = vmul.f32 %v270_v14, %v1469_v25 }
 0x3c0   :  { %v262_v19 = vpop.f32.mrf.mxu0 }
 0x3c1   :  { %v271_v20 = vmul.f32 %v269_v17, %v1469_v25  ;;  %v1114_v21 = vmul.f32 -1.442695, %v272_v18 }
 0x3c2   :  { %v1196_v23 = vpop.f32.mrf.mxu0 }
 0x3c3   :  { %v1113_v24 = vmul.f32 -1.442695, %v271_v20  ;;  %1268 = vpow2.f32 %v1114_v21 }
 0x3c5   :  { %1270 = vpow2.f32 %v1113_v24 }
 0x3d0   :  { %v1269_v27 = vpop.eup %1268 }
 0x3d1   :  { %v280_v28 = vadd.f32 1.0, %v1269_v27 }
 0x3d2   :  { %v1271_v29 = vpop.eup %1270 }
 0x3d3   :  { %v279_v30 = vadd.f32 1.0, %v1271_v29  ;;  %1272 = vrcp.f32 %v280_v28 }
 0x3d5   :  { %1274 = vrcp.f32 %v279_v30 }
 0x3e0   :  { %v1273_v31 = vpop.eup %1272 }
 0x3e1   :  { %v286_v32 = vmul.f32 2.0, %v1273_v31  ;;  %v296_v43 = vmul.f32 %v1273_v31, %v292_v41 }
 0x3e2   :  { %v1275_v33 = vpop.eup %1274 }
 0x3e3   :  { %v1116_v34 = vadd.f32 -1.0, %v286_v32  ;;  %v285_v35 = vmul.f32 2.0, %v1275_v33  ;;  %v295_v46 = vmul.f32 %v1275_v33, %v291_v42 }
 0x3e5   :  { %301 = vrot.lane.b32.xlu0 %v1116_v34, %s1413_s0  ;;  %v1115_v36 = vadd.f32 -1.0, %v285_v35 }
 0x3e7   :  { %299 = vrot.lane.b32.xlu1 %v1115_v36, %s1413_s0 }
 0x457   :  { %v302_v37 = vpop.permute.xlu0 %301 }
 0x458   :  { %v306_v38 = vmul.f32 %v1273_v31, %v302_v37 }
 0x459   :  { %v300_v39 = vpop.permute.xlu1 %299 }
 0x45a   :  { %v305_v40 = vmul.f32 %v1275_v33, %v300_v39  ;;  %311 = vrot.lane.b32.xlu0 %v306_v38, %s1414_s1 }
 0x45c   :  { %309 = vrot.lane.b32.xlu1 %v305_v40, %s1414_s1 }
 0x4cc   :  { %v312_v44 = vpop.permute.xlu0 %311 }
 0x4cd   :  { %v1508_v45 = vadd.f32 %v312_v44, %v296_v43 }
 0x4ce   :  { %v310_v47 = vpop.permute.xlu1 %309 }
 0x4cf   :  { %1276 = vtanh.f32 %v1508_v45  ;;  %v315_v48 = vadd.f32 %v310_v47, %v295_v46 }
 0x4d1   :  { %1278 = vtanh.f32 %v315_v48  ;;  %v410_v32 = vrot.slane %v315_v48, 7 }
 0x4dc   :  { %v1277_v49 = vpop.eup %1276 }
 0x4dd   :  { %323 = vrot.lane.b32.xlu0 %v1277_v49, %s1413_s0 }
 0x4de   :  { %v1279_v50 = vpop.eup %1278 }
 0x4df   :  { %321 = vrot.lane.b32.xlu1 %v1279_v50, %s1413_s0 }
 0x54f   :  { %v324_v51 = vpop.permute.xlu0 %323 }
 0x550   :  { %v328_v52 = vmul.f32 %v1273_v31, %v324_v51 }
 0x551   :  { %v322_v53 = vpop.permute.xlu1 %321 }
 0x552   :  { %v327_v54 = vmul.f32 %v1275_v33, %v322_v53  ;;  %v330_v55 = vpack.c.bf16 %v328_v52, %v328_v52  ;;  %v411_v33 = vrot.slane %v1508_v45, 7 }
 0x554   :  { %v329_v56 = vpack.c.bf16 %v327_v54, %v327_v54  ;;  %v334_v58 = vunpack.c.l.b16 %v330_v55 }
 0x556   :  { %v333_v57 = vunpack.c.l.b16 %v329_v56 }
 0x558   :  { %v335_v59 = vrot.slane %v333_v57, 1 }
 0x55a   :  { %v336_v60 = vsel %vm217_vm5, %v334_v58, %v335_v59 }
 0x55b   :  { %v337_v61 = vpack.c.b16 %v336_v60, %v336_v60 }
 0x55d   :  { %338 = vrot.lane.b32.xlu1 %v337_v61, %s1414_s1 }
 0x5cf   :  { %v339_v62 = vpop.permute.xlu1 %338 }
 0x5d0   :  { %1202 = vmatmul.mubr.msk.bf16.vlgmr.msra.gmra.mxu1 %vm108_vm6, %v339_v62 }
 0x5d1   :  { %1214 = vmatpush3.bf16.msra.mxu1 %v1443_v8  ;;  %1217 = vmatprep.mubr.msk.bf16.mxu1 %vm1410_vm0, %v1409_v0 }
 0x5d2   :  { %1215 = vmatprep.subr.bf16.mxu1 %v1409_v0 }
 0x5d5   :  { %1216 = vmatpush3.bf16.msra.mxu1 %v1446_v12 }
 0x5d6   :  { %1229 = vmatprep.subr.bf16.mxu1 %v1409_v0 }
 0x690   :  { %v377_v63 = vpop.f32.mrf.mxu1 }
 0x691   :  { %v384_v1 = vrot.slane %v377_v63, 6  ;;  %v385_v2 = vrot.slane %v377_v63, 7 }
 0x692   :  { %v1203_v3 = vpop.f32.mrf.mxu1 }
 0x693   :  { %v388_v4 = vadd.f32 %v384_v1, %v1467_v22  ;;  %v389_v5 = vadd.f32 %v385_v2, %v1471_v26 }
 0x694   :  { %v380_v6 = vpop.f32.mrf.mxu1 }
 0x695   :  { %v390_v7 = vmul.f32 %v388_v4, %v1469_v25  ;;  %v391_v9 = vmul.f32 %v389_v5, %v1469_v25 }
 0x696   :  { %v1204_v10 = vpop.f32.mrf.mxu1 }
 0x697   :  { %v1118_v11 = vmul.f32 -1.442695, %v390_v7  ;;  %v1119_v13 = vmul.f32 -1.442695, %v391_v9 }
 0x699   :  { %1280 = vpow2.f32 %v1118_v11 }
 0x69a   :  { %1282 = vpow2.f32 %v1119_v13 }
 0x6a6   :  { %v1281_v14 = vpop.eup %1280 }
 0x6a7   :  { %v1283_v16 = vpop.eup %1282  ;;  %v398_v17 = vadd.f32 1.0, %v1281_v14 }
 0x6a8   :  { %v399_v18 = vadd.f32 1.0, %v1283_v16 }
 0x6a9   :  { %1284 = vrcp.f32 %v398_v17 }
 0x6aa   :  { %1286 = vrcp.f32 %v399_v18 }
 0x6b6   :  { %v1285_v19 = vpop.eup %1284 }
 0x6b7   :  { %v1287_v20 = vpop.eup %1286  ;;  %v404_v21 = vmul.f32 2.0, %v1285_v19  ;;  %v414_v34 = vmul.f32 %v1285_v19, %v410_v32 }
 0x6b8   :  { %v405_v23 = vmul.f32 2.0, %v1287_v20  ;;  %v415_v35 = vmul.f32 %v1287_v20, %v411_v33 }
 0x6b9   :  { %v1120_v24 = vadd.f32 -1.0, %v404_v21 }
 0x6ba   :  { %v1121_v27 = vadd.f32 -1.0, %v405_v23 }
 0x6bb   :  { %418 = vrot.lane.b32.xlu0 %v1120_v24, %s1413_s0 }
 0x6bc   :  { %420 = vrot.lane.b32.xlu1 %v1121_v27, %s1413_s0 }
 0x72d   :  { %v419_v28 = vpop.permute.xlu0 %418 }
 0x72e   :  { %v421_v29 = vpop.permute.xlu1 %420  ;;  %v424_v30 = vmul.f32 %v1285_v19, %v419_v28 }
 0x72f   :  { %v425_v31 = vmul.f32 %v1287_v20, %v421_v29 }
 0x730   :  { %428 = vrot.lane.b32.xlu0 %v424_v30, %s1414_s1 }
 0x731   :  { %430 = vrot.lane.b32.xlu1 %v425_v31, %s1414_s1 }
 0x7a2   :  { %v429_v36 = vpop.permute.xlu0 %428 }
 0x7a3   :  { %v431_v37 = vpop.permute.xlu1 %430  ;;  %v1531_v38 = vadd.f32 %v429_v36, %v414_v34 }
 0x7a4   :  { %v1533_v39 = vadd.f32 %v431_v37, %v415_v35 }
 0x7a5   :  { %1288 = vtanh.f32 %v1531_v38  ;;  %v530_v21 = vrot.slane %v1531_v38, 7 }
 0x7a6   :  { %1290 = vtanh.f32 %v1533_v39  ;;  %v531_v23 = vrot.slane %v1533_v39, 7 }
 0x7b2   :  { %v1289_v40 = vpop.eup %1288 }
 0x7b3   :  { %v1291_v41 = vpop.eup %1290  ;;  %440 = vrot.lane.b32.xlu0 %v1289_v40, %s1413_s0 }
 0x7b4   :  { %442 = vrot.lane.b32.xlu1 %v1291_v41, %s1413_s0 }
 0x825   :  { %v441_v42 = vpop.permute.xlu0 %440 }
 0x826   :  { %v443_v43 = vpop.permute.xlu1 %442  ;;  %v446_v44 = vmul.f32 %v1285_v19, %v441_v42 }
 0x827   :  { %v447_v45 = vmul.f32 %v1287_v20, %v443_v43 }
 0x828   :  { %v448_v46 = vpack.c.bf16 %v446_v44, %v446_v44 }
 0x829   :  { %v449_v47 = vpack.c.bf16 %v447_v45, %v447_v45 }
 0x82a   :  { %v452_v48 = vunpack.c.l.b16 %v448_v46 }
 0x82b   :  { %v453_v49 = vunpack.c.l.b16 %v449_v47 }
 0x82c   :  { %v454_v50 = vrot.slane %v452_v48, 2 }
 0x82d   :  { %v455_v51 = vrot.slane %v453_v49, 1 }
 0x82f   :  { %v456_v52 = vsel %vm217_vm5, %v455_v51, %v454_v50 }
 0x830   :  { %v457_v53 = vpack.c.b16 %v456_v52, %v456_v52 }
 0x832   :  { %458 = vrot.lane.b32.xlu0 %v457_v53, %s1414_s1 }
 0x8a4   :  { %v459_v54 = vpop.permute.xlu0 %458 }
 0x8a5   :  { %1210 = vmatmul.mubr.msk.bf16.vlgmr.msra.gmra.mxu0 %vm108_vm6, %v459_v54 }
 0x8a6   :  { %1222 = vmatpush3.bf16.msra.mxu0 %v1443_v8  ;;  %1225 = vmatprep.mubr.msk.bf16.mxu0 %vm1410_vm0, %v1409_v0 }
 0x8a7   :  { %1223 = vmatprep.subr.bf16.mxu0 %v1409_v0 }
 0x8aa   :  { %1224 = vmatpush3.bf16.msra.mxu0 %v1446_v12 }
 0x8ab   :  { %1237 = vmatprep.subr.bf16.mxu0 %v1409_v0 }
 0x965   :  { %v497_v55 = vpop.f32.mrf.mxu0 }
 0x966   :  { %v504_v56 = vrot.slane %v497_v55, 5  ;;  %v505_v57 = vrot.slane %v497_v55, 6 }
 0x967   :  { %v1211_v58 = vpop.f32.mrf.mxu0 }
 0x968   :  { %v508_v59 = vadd.f32 %v504_v56, %v1467_v22  ;;  %v509_v60 = vadd.f32 %v505_v57, %v1471_v26 }
 0x969   :  { %v500_v61 = vpop.f32.mrf.mxu0 }
 0x96a   :  { %v510_v62 = vmul.f32 %v508_v59, %v1469_v25  ;;  %v511_v63 = vmul.f32 %v509_v60, %v1469_v25 }
 0x96b   :  { %v1212_v1 = vpop.f32.mrf.mxu0 }
 0x96c   :  { %v1123_v2 = vmul.f32 -1.442695, %v510_v62  ;;  %v1124_v3 = vmul.f32 -1.442695, %v511_v63 }
 0x96e   :  { %1292 = vpow2.f32 %v1123_v2 }
 0x96f   :  { %1294 = vpow2.f32 %v1124_v3 }
 0x97b   :  { %v1293_v4 = vpop.eup %1292 }
 0x97c   :  { %v1295_v5 = vpop.eup %1294  ;;  %v518_v6 = vadd.f32 1.0, %v1293_v4 }
 0x97d   :  { %v519_v7 = vadd.f32 1.0, %v1295_v5 }
 0x97e   :  { %1296 = vrcp.f32 %v518_v6 }
 0x97f   :  { %1298 = vrcp.f32 %v519_v7 }
 0x98b   :  { %v1297_v9 = vpop.eup %1296 }
 0x98c   :  { %v1299_v10 = vpop.eup %1298  ;;  %v524_v11 = vmul.f32 2.0, %v1297_v9  ;;  %v534_v24 = vmul.f32 %v1297_v9, %v530_v21 }
 0x98d   :  { %v525_v13 = vmul.f32 2.0, %v1299_v10  ;;  %v535_v27 = vmul.f32 %v1299_v10, %v531_v23 }
 0x98e   :  { %v1125_v14 = vadd.f32 -1.0, %v524_v11 }
 0x98f   :  { %v1126_v16 = vadd.f32 -1.0, %v525_v13 }
 0x990   :  { %538 = vrot.lane.b32.xlu1 %v1125_v14, %s1413_s0 }
 0x991   :  { %540 = vrot.lane.b32.xlu0 %v1126_v16, %s1413_s0 }
 0xa02   :  { %v539_v17 = vpop.permute.xlu1 %538 }
 0xa03   :  { %v541_v18 = vpop.permute.xlu0 %540  ;;  %v544_v19 = vmul.f32 %v1297_v9, %v539_v17 }
 0xa04   :  { %v545_v20 = vmul.f32 %v1299_v10, %v541_v18 }
 0xa05   :  { %548 = vrot.lane.b32.xlu1 %v544_v19, %s1414_s1 }
 0xa06   :  { %550 = vrot.lane.b32.xlu0 %v545_v20, %s1414_s1 }
 0xa77   :  { %v549_v28 = vpop.permute.xlu1 %548 }
 0xa78   :  { %v551_v29 = vpop.permute.xlu0 %550  ;;  %v1558_v30 = vadd.f32 %v549_v28, %v534_v24 }
 0xa79   :  { %v1560_v31 = vadd.f32 %v551_v29, %v535_v27 }
 0xa7a   :  { %1300 = vtanh.f32 %v1558_v30  ;;  %v650_v11 = vrot.slane %v1558_v30, 7 }
 0xa7b   :  { %1302 = vtanh.f32 %v1560_v31  ;;  %v651_v13 = vrot.slane %v1560_v31, 7 }
 0xa87   :  { %v1301_v32 = vpop.eup %1300 }
 0xa88   :  { %v1303_v33 = vpop.eup %1302  ;;  %560 = vrot.lane.b32.xlu1 %v1301_v32, %s1413_s0 }
 0xa89   :  { %562 = vrot.lane.b32.xlu0 %v1303_v33, %s1413_s0 }
 0xafa   :  { %v561_v34 = vpop.permute.xlu1 %560 }
 0xafb   :  { %v563_v35 = vpop.permute.xlu0 %562  ;;  %v566_v36 = vmul.f32 %v1297_v9, %v561_v34 }
 0xafc   :  { %v567_v37 = vmul.f32 %v1299_v10, %v563_v35 }
 0xafd   :  { %v568_v38 = vpack.c.bf16 %v566_v36, %v566_v36 }
 0xafe   :  { %v569_v39 = vpack.c.bf16 %v567_v37, %v567_v37 }
 0xaff   :  { %v572_v40 = vunpack.c.l.b16 %v568_v38 }
 0xb00   :  { %v573_v41 = vunpack.c.l.b16 %v569_v39 }
 0xb01   :  { %v574_v42 = vrot.slane %v572_v40, 3 }
 0xb02   :  { %v575_v43 = vrot.slane %v573_v41, 2 }
 0xb04   :  { %v576_v44 = vsel %vm217_vm5, %v575_v43, %v574_v42 }
 0xb05   :  { %v577_v45 = vpack.c.b16 %v576_v44, %v576_v44 }
 0xb07   :  { %578 = vrot.lane.b32.xlu1 %v577_v45, %s1414_s1 }
 0xb79   :  { %v579_v46 = vpop.permute.xlu1 %578 }
 0xb7a   :  { %1218 = vmatmul.mubr.msk.bf16.vlgmr.msra.gmra.mxu1 %vm108_vm6, %v579_v46 }
 0xb7b   :  { %1230 = vmatpush3.bf16.msra.mxu1 %v1443_v8  ;;  %1233 = vmatprep.mubr.msk.bf16.mxu1 %vm1410_vm0, %v1409_v0 }
 0xb7c   :  { %1231 = vmatprep.subr.bf16.mxu1 %v1409_v0 }
 0xb7f   :  { %1232 = vmatpush3.bf16.msra.mxu1 %v1446_v12 }
 0xc3a   :  { %v617_v47 = vpop.f32.mrf.mxu1 }
 0xc3b   :  { %v624_v48 = vrot.slane %v617_v47, 4  ;;  %v625_v49 = vrot.slane %v617_v47, 5 }
 0xc3c   :  { %v1219_v50 = vpop.f32.mrf.mxu1 }
 0xc3d   :  { %v628_v51 = vadd.f32 %v624_v48, %v1467_v22  ;;  %v629_v52 = vadd.f32 %v625_v49, %v1471_v26 }
 0xc3e   :  { %v620_v53 = vpop.f32.mrf.mxu1 }
 0xc3f   :  { %v630_v54 = vmul.f32 %v628_v51, %v1469_v25  ;;  %v631_v55 = vmul.f32 %v629_v52, %v1469_v25 }
 0xc40   :  { %v1220_v56 = vpop.f32.mrf.mxu1 }
 0xc41   :  { %v1128_v57 = vmul.f32 -1.442695, %v630_v54  ;;  %v1129_v58 = vmul.f32 -1.442695, %v631_v55 }
 0xc43   :  { %1304 = vpow2.f32 %v1128_v57 }
 0xc44   :  { %1306 = vpow2.f32 %v1129_v58 }
 0xc50   :  { %v1305_v59 = vpop.eup %1304 }
 0xc51   :  { %v1307_v60 = vpop.eup %1306  ;;  %v638_v61 = vadd.f32 1.0, %v1305_v59 }
 0xc52   :  { %v639_v62 = vadd.f32 1.0, %v1307_v60 }
 0xc53   :  { %1308 = vrcp.f32 %v638_v61 }
 0xc54   :  { %1310 = vrcp.f32 %v639_v62 }
 0xc60   :  { %v1309_v63 = vpop.eup %1308 }
 0xc61   :  { %v1311_v1 = vpop.eup %1310  ;;  %v644_v2 = vmul.f32 2.0, %v1309_v63  ;;  %v654_v14 = vmul.f32 %v1309_v63, %v650_v11 }
 0xc62   :  { %v645_v3 = vmul.f32 2.0, %v1311_v1  ;;  %v655_v16 = vmul.f32 %v1311_v1, %v651_v13 }
 0xc63   :  { %v1130_v4 = vadd.f32 -1.0, %v644_v2 }
 0xc64   :  { %v1131_v5 = vadd.f32 -1.0, %v645_v3 }
 0xc65   :  { %658 = vrot.lane.b32.xlu0 %v1130_v4, %s1413_s0 }
 0xc66   :  { %660 = vrot.lane.b32.xlu1 %v1131_v5, %s1413_s0 }
 0xcd7   :  { %v659_v6 = vpop.permute.xlu0 %658 }
 0xcd8   :  { %v661_v7 = vpop.permute.xlu1 %660  ;;  %v664_v9 = vmul.f32 %v1309_v63, %v659_v6 }
 0xcd9   :  { %v665_v10 = vmul.f32 %v1311_v1, %v661_v7 }
 0xcda   :  { %668 = vrot.lane.b32.xlu0 %v664_v9, %s1414_s1 }
 0xcdb   :  { %670 = vrot.lane.b32.xlu1 %v665_v10, %s1414_s1 }
 0xd4c   :  { %v669_v17 = vpop.permute.xlu0 %668 }
 0xd4d   :  { %v671_v18 = vpop.permute.xlu1 %670  ;;  %v1584_v19 = vadd.f32 %v669_v17, %v654_v14 }
 0xd4e   :  { %v1586_v20 = vadd.f32 %v671_v18, %v655_v16 }
 0xd4f   :  { %1312 = vtanh.f32 %v1584_v19  ;;  %v770_v62 = vrot.slane %v1584_v19, 7 }
 0xd50   :  { %1314 = vtanh.f32 %v1586_v20 }
 0xd5c   :  { %v1313_v21 = vpop.eup %1312 }
 0xd5d   :  { %v1315_v23 = vpop.eup %1314  ;;  %680 = vrot.lane.b32.xlu0 %v1313_v21, %s1413_s0 }
 0xd5e   :  { %682 = vrot.lane.b32.xlu1 %v1315_v23, %s1413_s0 }
 0xdcf   :  { %v681_v24 = vpop.permute.xlu0 %680 }
 0xdd0   :  { %v683_v27 = vpop.permute.xlu1 %682  ;;  %v686_v28 = vmul.f32 %v1309_v63, %v681_v24  ;;  %v771_v63 = vrot.slane %v1586_v20, 7 }
 0xdd1   :  { %v687_v29 = vmul.f32 %v1311_v1, %v683_v27 }
 0xdd2   :  { %v688_v30 = vpack.c.bf16 %v686_v28, %v686_v28 }
 0xdd3   :  { %v689_v31 = vpack.c.bf16 %v687_v29, %v687_v29 }
 0xdd4   :  { %v692_v32 = vunpack.c.l.b16 %v688_v30 }
 0xdd5   :  { %v693_v33 = vunpack.c.l.b16 %v689_v31 }
 0xdd6   :  { %v694_v34 = vrot.slane %v692_v32, 4 }
 0xdd7   :  { %v695_v35 = vrot.slane %v693_v33, 3 }
 0xdd9   :  { %v696_v36 = vsel %vm217_vm5, %v695_v35, %v694_v34 }
 0xdda   :  { %v697_v37 = vpack.c.b16 %v696_v36, %v696_v36 }
 0xddc   :  { %698 = vrot.lane.b32.xlu0 %v697_v37, %s1414_s1 }
 0xe4e   :  { %v699_v38 = vpop.permute.xlu0 %698 }
 0xe4f   :  { %1226 = vmatmul.mubr.msk.bf16.vlgmr.msra.gmra.mxu0 %vm108_vm6, %v699_v38 }
 0xe50   :  { %1238 = vmatpush3.bf16.msra.mxu0 %v1443_v8  ;;  %1241 = vmatprep.mubr.msk.bf16.mxu0 %vm1410_vm0, %v1409_v0 }
 0xe51   :  { %1239 = vmatprep.subr.bf16.mxu0 %v1409_v0 }
 0xe54   :  { %1240 = vmatpush3.bf16.msra.mxu0 %v1446_v12 }
 0xf0f   :  { %v737_v39 = vpop.f32.mrf.mxu0 }
 0xf10   :  { %v744_v40 = vrot.slane %v737_v39, 3  ;;  %v745_v41 = vrot.slane %v737_v39, 4 }
 0xf11   :  { %v1227_v42 = vpop.f32.mrf.mxu0 }
 0xf12   :  { %v748_v43 = vadd.f32 %v744_v40, %v1467_v22  ;;  %v749_v44 = vadd.f32 %v745_v41, %v1471_v26 }
 0xf13   :  { %v740_v45 = vpop.f32.mrf.mxu0 }
 0xf14   :  { %v750_v46 = vmul.f32 %v748_v43, %v1469_v25  ;;  %v751_v8 = vmul.f32 %v749_v44, %v1469_v25 }
 0xf15   :  { %v1228_v47 = vpop.f32.mrf.mxu0 }
 0xf16   :  { %v1133_v48 = vmul.f32 -1.442695, %v750_v46  ;;  %v1134_v49 = vmul.f32 -1.442695, %v751_v8 }
 0xf18   :  { %1316 = vpow2.f32 %v1133_v48 }
 0xf19   :  { %1318 = vpow2.f32 %v1134_v49 }
 0xf25   :  { %v1317_v0 = vpop.eup %1316 }
 0xf26   :  { %v1319_v12 = vpop.eup %1318  ;;  %v758_v50 = vadd.f32 1.0, %v1317_v0 }
 0xf27   :  { %v759_v51 = vadd.f32 1.0, %v1319_v12 }
 0xf28   :  { %1320 = vrcp.f32 %v758_v50 }
 0xf29   :  { %1322 = vrcp.f32 %v759_v51 }
 0xf35   :  { %v1321_v52 = vpop.eup %1320 }
 0xf36   :  { %v1323_v53 = vpop.eup %1322  ;;  %v764_v54 = vmul.f32 2.0, %v1321_v52  ;;  %v774_v1 = vmul.f32 %v1321_v52, %v770_v62 }
 0xf37   :  { %v765_v55 = vmul.f32 2.0, %v1323_v53  ;;  %v775_v2 = vmul.f32 %v1323_v53, %v771_v63 }
 0xf38   :  { %v1135_v56 = vadd.f32 -1.0, %v764_v54 }
 0xf39   :  { %v1136_v57 = vadd.f32 -1.0, %v765_v55 }
 0xf3a   :  { %778 = vrot.lane.b32.xlu1 %v1135_v56, %s1413_s0 }
 0xf3b   :  { %780 = vrot.lane.b32.xlu0 %v1136_v57, %s1413_s0 }
 0xfac   :  { %v779_v58 = vpop.permute.xlu1 %778 }
 0xfad   :  { %v781_v59 = vpop.permute.xlu0 %780  ;;  %v784_v60 = vmul.f32 %v1321_v52, %v779_v58 }
 0xfae   :  { %v785_v61 = vmul.f32 %v1323_v53, %v781_v59 }
 0xfaf   :  { %788 = vrot.lane.b32.xlu1 %v784_v60, %s1414_s1 }
 0xfb0   :  { %790 = vrot.lane.b32.xlu0 %v785_v61, %s1414_s1 }
0x1021   :  { %v789_v3 = vpop.permute.xlu1 %788 }
0x1022   :  { %v791_v4 = vpop.permute.xlu0 %790  ;;  %v794_v5 = vadd.f32 %v789_v3, %v774_v1 }
0x1023   :  { %v795_v6 = vadd.f32 %v791_v4, %v775_v2 }
0x1024   :  { %1324 = vtanh.f32 %v794_v5  ;;  %v890_v51 = vrot.slane %v794_v5, 7 }
0x1025   :  { %1326 = vtanh.f32 %v795_v6 }
0x1031   :  { %v1325_v7 = vpop.eup %1324 }
0x1032   :  { %v1327_v9 = vpop.eup %1326  ;;  %800 = vrot.lane.b32.xlu1 %v1325_v7, %s1413_s0 }
0x1033   :  { %802 = vrot.lane.b32.xlu0 %v1327_v9, %s1413_s0 }
0x10a4   :  { %v801_v10 = vpop.permute.xlu1 %800 }
0x10a5   :  { %v803_v11 = vpop.permute.xlu0 %802  ;;  %v806_v13 = vmul.f32 %v1321_v52, %v801_v10  ;;  %v891_v52 = vrot.slane %v795_v6, 7 }
0x10a6   :  { %v807_v14 = vmul.f32 %v1323_v53, %v803_v11 }
0x10a7   :  { %v808_v16 = vpack.c.bf16 %v806_v13, %v806_v13 }
0x10a8   :  { %v809_v17 = vpack.c.bf16 %v807_v14, %v807_v14 }
0x10a9   :  { %v812_v18 = vunpack.c.l.b16 %v808_v16 }
0x10aa   :  { %v813_v19 = vunpack.c.l.b16 %v809_v17 }
0x10ab   :  { %v814_v20 = vrot.slane %v812_v18, 5 }
0x10ac   :  { %v815_v21 = vrot.slane %v813_v19, 4 }
0x10ae   :  { %v816_v23 = vsel %vm217_vm5, %v815_v21, %v814_v20 }
0x10af   :  { %v817_v24 = vpack.c.b16 %v816_v23, %v816_v23 }
0x10b1   :  { %818 = vrot.lane.b32.xlu1 %v817_v24, %s1414_s1 }
0x1123   :  { %v819_v27 = vpop.permute.xlu1 %818 }
0x1124   :  { %1234 = vmatmul.mubr.msk.bf16.vlgmr.msra.gmra.mxu1 %vm108_vm6, %v819_v27 }
0x11e4   :  { %v857_v28 = vpop.f32.mrf.mxu1 }
0x11e5   :  { %v864_v29 = vrot.slane %v857_v28, 2  ;;  %v865_v30 = vrot.slane %v857_v28, 3 }
0x11e6   :  { %v1235_v31 = vpop.f32.mrf.mxu1 }
0x11e7   :  { %v868_v32 = vadd.f32 %v864_v29, %v1467_v22  ;;  %v869_v33 = vadd.f32 %v865_v30, %v1471_v26 }
0x11e8   :  { %v860_v34 = vpop.f32.mrf.mxu1 }
0x11e9   :  { %v870_v35 = vmul.f32 %v868_v32, %v1469_v25  ;;  %v871_v36 = vmul.f32 %v869_v33, %v1469_v25 }
0x11ea   :  { %v1236_v37 = vpop.f32.mrf.mxu1 }
0x11eb   :  { %v1138_v38 = vmul.f32 -1.442695, %v870_v35  ;;  %v1139_v39 = vmul.f32 -1.442695, %v871_v36 }
0x11ed   :  { %1328 = vpow2.f32 %v1138_v38 }
0x11ee   :  { %1330 = vpow2.f32 %v1139_v39 }
0x11fa   :  { %v1329_v40 = vpop.eup %1328 }
0x11fb   :  { %v1331_v41 = vpop.eup %1330  ;;  %v878_v42 = vadd.f32 1.0, %v1329_v40 }
0x11fc   :  { %v879_v43 = vadd.f32 1.0, %v1331_v41 }
0x11fd   :  { %1332 = vrcp.f32 %v878_v42 }
0x11fe   :  { %1334 = vrcp.f32 %v879_v43 }
0x120a   :  { %v1333_v44 = vpop.eup %1332 }
0x120b   :  { %v1335_v45 = vpop.eup %1334  ;;  %v884_v46 = vmul.f32 2.0, %v1333_v44  ;;  %v894_v53 = vmul.f32 %v1333_v44, %v890_v51 }
0x120c   :  { %v885_v8 = vmul.f32 2.0, %v1335_v45  ;;  %v895_v54 = vmul.f32 %v1335_v45, %v891_v52 }
0x120d   :  { %v1140_v47 = vadd.f32 -1.0, %v884_v46 }
0x120e   :  { %v1141_v48 = vadd.f32 -1.0, %v885_v8 }
0x120f   :  { %898 = vrot.lane.b32.xlu0 %v1140_v47, %s1413_s0  ;;  %v1050_v47 = vsub.s32 1, %v1464_v15 }
0x1210   :  { %900 = vrot.lane.b32.xlu1 %v1141_v48, %s1413_s0 }
0x1281   :  { %v899_v49 = vpop.permute.xlu0 %898 }
0x1282   :  { %v901_v0 = vpop.permute.xlu1 %900  ;;  %v904_v12 = vmul.f32 %v1333_v44, %v899_v49 }
0x1283   :  { %v905_v50 = vmul.f32 %v1335_v45, %v901_v0  ;;  %v1360_v0 = vld [vmem:[#allocation4 + $0x30] sm:$0x3] }
0x1284   :  { %908 = vrot.lane.b32.xlu0 %v904_v12, %s1414_s1  ;;  %v1051_v12 = vrot.slane %v1360_v0, %v1050_v47 }
0x1285   :  { %910 = vrot.lane.b32.xlu1 %v905_v50, %s1414_s1 }
0x12f6   :  { %v909_v55 = vpop.permute.xlu0 %908 }
0x12f7   :  { %v911_v56 = vpop.permute.xlu1 %910  ;;  %v914_v57 = vadd.f32 %v909_v55, %v894_v53 }
0x12f8   :  { %v915_v58 = vadd.f32 %v911_v56, %v895_v54 }
0x12f9   :  { %1336 = vtanh.f32 %v914_v57  ;;  %v1010_v40 = vrot.slane %v914_v57, 7 }
0x12fa   :  { %1338 = vtanh.f32 %v915_v58  ;;  %v1011_v41 = vrot.slane %v915_v58, 7 }
0x1306   :  { %v1337_v59 = vpop.eup %1336 }
0x1307   :  { %v1339_v60 = vpop.eup %1338  ;;  %920 = vrot.lane.b32.xlu0 %v1337_v59, %s1413_s0 }
0x1308   :  { %922 = vrot.lane.b32.xlu1 %v1339_v60, %s1413_s0 }
0x1379   :  { %v921_v61 = vpop.permute.xlu0 %920 }
0x137a   :  { %v923_v62 = vpop.permute.xlu1 %922  ;;  %v926_v63 = vmul.f32 %v1333_v44, %v921_v61 }
0x137b   :  { %v927_v1 = vmul.f32 %v1335_v45, %v923_v62 }
0x137c   :  { %v928_v2 = vpack.c.bf16 %v926_v63, %v926_v63 }
0x137d   :  { %v929_v3 = vpack.c.bf16 %v927_v1, %v927_v1 }
0x137e   :  { %v932_v4 = vunpack.c.l.b16 %v928_v2 }
0x137f   :  { %v933_v5 = vunpack.c.l.b16 %v929_v3 }
0x1380   :  { %v934_v6 = vrot.slane %v932_v4, 6 }
0x1381   :  { %v935_v7 = vrot.slane %v933_v5, 5 }
0x1383   :  { %v936_v9 = vsel %vm217_vm5, %v935_v7, %v934_v6 }
0x1384   :  { %v937_v10 = vpack.c.b16 %v936_v9, %v936_v9 }
0x1386   :  { %938 = vrot.lane.b32.xlu0 %v937_v10, %s1414_s1 }
0x13f8   :  { %v939_v11 = vpop.permute.xlu0 %938 }
0x13f9   :  { %1242 = vmatmul.mubr.msk.bf16.vlgmr.msra.gmra.mxu0 %vm108_vm6, %v939_v11 }
0x14b9   :  { %v977_v13 = vpop.f32.mrf.mxu0 }
0x14ba   :  { %v984_v14 = vrot.slane %v977_v13, 1  ;;  %v985_v16 = vrot.slane %v977_v13, 2 }
0x14bb   :  { %v1243_v17 = vpop.f32.mrf.mxu0 }
0x14bc   :  { %v988_v18 = vadd.f32 %v984_v14, %v1467_v22  ;;  %v989_v19 = vadd.f32 %v985_v16, %v1471_v26 }
0x14bd   :  { %v980_v20 = vpop.f32.mrf.mxu0 }
0x14be   :  { %v990_v21 = vmul.f32 %v988_v18, %v1469_v25  ;;  %v991_v23 = vmul.f32 %v989_v19, %v1469_v25 }
0x14bf   :  { %v1244_v24 = vpop.f32.mrf.mxu0 }
0x14c0   :  { %v1143_v27 = vmul.f32 -1.442695, %v990_v21  ;;  %v1144_v28 = vmul.f32 -1.442695, %v991_v23 }
0x14c2   :  { %1340 = vpow2.f32 %v1143_v27 }
0x14c3   :  { %1342 = vpow2.f32 %v1144_v28 }
0x14cf   :  { %v1341_v29 = vpop.eup %1340 }
0x14d0   :  { %v1343_v30 = vpop.eup %1342  ;;  %v998_v31 = vadd.f32 1.0, %v1341_v29 }
0x14d1   :  { %v999_v32 = vadd.f32 1.0, %v1343_v30 }
0x14d2   :  { %1344 = vrcp.f32 %v998_v31 }
0x14d3   :  { %1346 = vrcp.f32 %v999_v32 }
0x14df   :  { %v1345_v33 = vpop.eup %1344 }
0x14e0   :  { %v1347_v22 = vpop.eup %1346  ;;  %v1004_v34 = vmul.f32 2.0, %v1345_v33  ;;  %v1014_v42 = vmul.f32 %v1345_v33, %v1010_v40 }
0x14e1   :  { %v1005_v26 = vmul.f32 2.0, %v1347_v22  ;;  %v1015_v43 = vmul.f32 %v1347_v22, %v1011_v41 }
0x14e2   :  { %v1145_v35 = vadd.f32 -1.0, %v1004_v34 }
0x14e3   :  { %v1146_v36 = vadd.f32 -1.0, %v1005_v26 }
0x14e4   :  { %1018 = vrot.lane.b32.xlu0 %v1145_v35, %s1413_s0 }
0x14e5   :  { %1020 = vrot.lane.b32.xlu1 %v1146_v36, %s1413_s0 }
0x1556   :  { %v1019_v25 = vpop.permute.xlu0 %1018 }
0x1557   :  { %v1021_v37 = vpop.permute.xlu1 %1020  ;;  %v1024_v38 = vmul.f32 %v1345_v33, %v1019_v25 }
0x1558   :  { %v1025_v39 = vmul.f32 %v1347_v22, %v1021_v37 }
0x1559   :  { %1028 = vrot.lane.b32.xlu0 %v1024_v38, %s1414_s1 }
0x155a   :  { %1030 = vrot.lane.b32.xlu1 %v1025_v39, %s1414_s1 }
0x15cb   :  { %v1029_v44 = vpop.permute.xlu0 %1028 }
0x15cc   :  { %v1031_v45 = vpop.permute.xlu1 %1030  ;;  %v1034_v46 = vadd.f32 %v1029_v44, %v1014_v42 }
0x15cd   :  { %v1035_v8 = vadd.f32 %v1031_v45, %v1015_v43 }
0x15ce   :  { %1348 = vtanh.f32 %v1034_v46 }
0x15cf   :  { %1350 = vtanh.f32 %v1035_v8 }
0x15db   :  { %v1349_v48 = vpop.eup %1348 }
0x15dc   :  { %v1351_v49 = vpop.eup %1350  ;;  %1040 = vrot.lane.b32.xlu0 %v1349_v48, %s1413_s0 }
0x15dd   :  { %1042 = vrot.lane.b32.xlu1 %v1351_v49, %s1413_s0 }
0x15e1   :  { %1053 = vrot.lane.b32.xlu1 %v1051_v12, %s1415_s21 }
0x164e   :  { %v1041_v51 = vpop.permute.xlu0 %1040 }
0x164f   :  { %v1043_v50 = vpop.permute.xlu1 %1042  ;;  %v1046_v53 = vmul.f32 %v1345_v33, %v1041_v51 }
0x1650   :  { %v1047_v52 = vmul.f32 %v1347_v22, %v1043_v50 }
0x1653   :  { %v1054_v54 = vpop.permute.xlu1 %1053 }
0x1654   :  { %v1056_v55 = vmul.f32 %v1054_v54, %v1046_v53  ;;  %v1057_v56 = vmul.f32 %v1054_v54, %v1047_v52 }
0x1656   :  { %v1060_v57 = vrot.slane %v1057_v56, 7  ;;  %1061 = vrot.lane.b32.xlu0 %v1056_v55, %s1414_s1 }
0x1658   :  { %1063 = vrot.lane.b32.xlu1 %v1060_v57, %s1414_s1 }
0x16c8   :  { %v1062_v15 = vpop.permute.xlu0 %1061 }
0x16c9   :  { %v1068_v58 = vsel %vm1067_vm7, %v1062_v15, 0.0 }
0x16ca   :  { %v1064_v59 = vpop.permute.xlu1 %1063  ;;  %1069 = vadd.xlane.f32.xlu0 %v1068_v58 }
0x16cb   :  { %v1072_v60 = vsel %vm1071_vm8, %v1064_v59, 0.0 }
0x16cc   :  { %1073 = vadd.xlane.f32.xlu1 %v1072_v60 }
0x1753   :  { %v1070_v61 = vpop.xlane.xlu0 %1069 }
0x1754   :  { %v1075_v62 = vadd.f32 %v1070_v61, %v1051_v12 }
0x1755   :  { %v1074_v63 = vpop.xlane.xlu1 %1073 }
0x1756   :  { %v1147_v1 = vmul.f32 -1.442695, %v1075_v62  ;;  %v1076_v2 = vadd.f32 %v1074_v63, %v1051_v12 }
0x1758   :  { %1352 = vpow2.f32 %v1147_v1  ;;  %v1148_v3 = vmul.f32 -1.442695, %v1076_v2 }
0x175a   :  { %1354 = vpow2.f32 %v1148_v3 }
0x1765   :  { %v1353_v4 = vpop.eup %1352 }
0x1766   :  { %v1083_v5 = vadd.f32 1.0, %v1353_v4 }
0x1767   :  { %v1355_v6 = vpop.eup %1354 }
0x1768   :  { %1356 = vrcp.f32 %v1083_v5  ;;  %v1084_v7 = vadd.f32 1.0, %v1355_v6 }
0x176a   :  { %1358 = vrcp.f32 %v1084_v7 }
0x1775   :  { %v1357_v9 = vpop.eup %1356 }
0x1776   :  { %1091 = vrot.lane.b32.xlu0 %v1357_v9, %s1415_s21 }
0x1777   :  { %v1359_v10 = vpop.eup %1358 }
0x1778   :  { %1093 = vrot.lane.b32.xlu1 %v1359_v10, %s1415_s21 }
0x17e8   :  { %v1092_v11 = vpop.permute.xlu0 %1091 }
0x17e9   :  { %1098 = vst.msk [vmem:[%s1652_s2 - $0x7] sm:$0x80] %vm1097_vm9, %v1092_v11 }
0x17ea   :  { %v1094_v13 = vpop.permute.xlu1 %1093 }
0x17eb   :  { %1100 = vst.msk [vmem:[%s1652_s2 + $0x1] sm:$0x1] %vm1099_vm10, %v1094_v13 }
0x17ec   :  { %1105 = vsyncpa [#allocation3], 1 }
0x17ed   :  { %1106 = vsyncpa [#allocation5], 1 }

</bundles_post_ra>
